<compile_context>
chip_gen: v5e
topology: v5e:2x2
jax: 0.10.0
libtpu: 0.0.40
codegen_flags: <defaults>
</compile_context>

<pallas_src>
import functools

import jax
import jax.numpy as jnp
import numpy as np
from jax.experimental import pallas as pl
from jax.experimental.pallas import tpu as pltpu


# ----------------------------------------------------------------------------
# Fused wavefront kernel: all RNN layers + decoder, one launch
# ----------------------------------------------------------------------------
def _wavefront_rnn_kernel(xinj_ref, wbig_ref, bbig_ref, h0_ref, wdec_ref,
                          bdec_ref, out_ref, hT_ref, ys_ref,
                          *, seq, batch, hidden, num_layers):
    """Wavefront stacked tanh-RNN + Linear decoder.

    xinj_ref : (S*B, L*H)  layer-0 token projection in block 0, zeros elsewhere
    wbig_ref : (L*H, L*H)  diag blocks W_hh^l.T, superdiag blocks W_ih^l.T
    bbig_ref : (1, L*H)    per-layer b_ih + b_hh
    h0_ref   : (B, L*H)    initial hidden states, block l = h0[l]
    wdec_ref : (H, O_pad)  decoder weight^T padded to 128-lane width
    bdec_ref : (1, O_pad)
    out_ref  : (S*B, O_pad) logits (lane-dense)
    hT_ref   : (L, B, H)   final hidden states
    ys_ref   : (S*B, H)    VMEM scratch holding top-layer outputs
    """
    L, H, B, S = num_layers, hidden, batch, seq

    # Hoist weight/bias loads out of the recurrence.
    wbig = wbig_ref[...]
    bbig = bbig_ref[...]
    s = h0_ref[...]                       # (B, L*H) wavefront state, kept in vregs

    # S + L - 1 serially-dependent steps (vs. S*L in the naive formulation).
    for d in range(S + L - 1):
        z = jnp.dot(s, wbig, preferred_element_type=jnp.float32) + bbig
        if d < S:
            # Inject the precomputed layer-0 input contribution (block 0 only;
            # the array is zero-padded in the other blocks).
            z = z + xinj_ref[d * B:(d + 1) * B, :]
        h_new = jnp.tanh(z)

        if d < L - 1:
            # Layers that have not started yet must keep their initial state.
            col = jax.lax.broadcasted_iota(jnp.int32, (1, L * H), 1)
            keep = col < (d + 1) * H
            h_new = jnp.where(keep, h_new, s)

        s = h_new

        # Layer l finishes its last timestep (t = S-1) at step d = S-1+l.
        l_fin = d - (S - 1)
        if 0 <= l_fin < L:
            hT_ref[l_fin] = h_new[:, l_fin * H:(l_fin + 1) * H]

        # Top layer emits timestep t = d - (L-1).
        t_out = d - (L - 1)
        if 0 <= t_out < S:
            ys_ref[t_out * B:(t_out + 1) * B, :] = h_new[:, (L - 1) * H:]

    # Decoder fused into the same launch; output is lane-dense (O padded to a
    # multiple of 128) so the store is an unmasked slab.
    out_ref[...] = (jnp.dot(ys_ref[...], wdec_ref[...],
                            preferred_element_type=jnp.float32)
                    + bdec_ref[...])


def _rnn_forward_wavefront(xinj, wbig, bbig, h0_wave, wdec_pad, bdec_pad,
                           *, seq, batch, hidden, num_layers, out_pad):
    kernel = functools.partial(_wavefront_rnn_kernel, seq=seq, batch=batch,
                               hidden=hidden, num_layers=num_layers)
    out2d, hT = pl.pallas_call(
        kernel,
        out_shape=(jax.ShapeDtypeStruct((seq * batch, out_pad), jnp.float32),
                   jax.ShapeDtypeStruct((num_layers, batch, hidden), jnp.float32)),
        grid=(1,),
        in_specs=[
            pl.BlockSpec(xinj.shape, lambda i: (0, 0)),
            pl.BlockSpec(wbig.shape, lambda i: (0, 0)),
            pl.BlockSpec(bbig.shape, lambda i: (0, 0)),
            pl.BlockSpec(h0_wave.shape, lambda i: (0, 0)),
            pl.BlockSpec(wdec_pad.shape, lambda i: (0, 0)),
            pl.BlockSpec(bdec_pad.shape, lambda i: (0, 0)),
        ],
        out_specs=(
            pl.BlockSpec((seq * batch, out_pad), lambda i: (0, 0)),
            pl.BlockSpec((num_layers, batch, hidden), lambda i: (0, 0, 0)),
        ),
        scratch_shapes=[
            pltpu.VMEM((seq * batch, hidden), jnp.float32),   # top-layer outputs
        ],
        compiler_params=pltpu.CompilerParams(
            dimension_semantics=("arbitrary",)),
    )(xinj, wbig, bbig, h0_wave, wdec_pad, bdec_pad)
    return out2d, hT


# ----------------------------------------------------------------------------
# MyRNN forward (matches the PyTorch module with do_dropout=False)
# ----------------------------------------------------------------------------
def my_rnn_forward(input_seq, params, hidden_state, *, input_size):
    """input_seq: (seq, batch) int32.  Returns (logits, new_hidden_state)."""
    seq, batch = input_seq.shape
    rnn = params["rnn"]
    num_layers = len(rnn)
    hidden = rnn[0][0].shape[0]
    w_dec, b_dec = params["decoder"]
    out_dim = w_dec.shape[0]
    del input_size  # implied by rnn[0][0].shape[1]

    L, H = num_layers, hidden

    # Pad batch to a multiple of 8 so per-step sublane slices stay aligned.
    pad_b = (-batch) % 8
    if pad_b:
        input_seq = jnp.pad(input_seq, ((0, 0), (0, pad_b)))
        hidden_state = jnp.pad(hidden_state, ((0, 0), (0, pad_b), (0, 0)))
    bk = batch + pad_b

    # Layer-0 input projection: one_hot(tokens, V) @ W_ih0^T is a row gather of
    # W_ih0^T.  Zero-pad to (S*B, L*H) so the kernel adds it straight into the
    # block-0 columns of the wavefront pre-activation.
    w_ih0 = rnn[0][0]
    x0 = jnp.take(w_ih0.T, input_seq.reshape(-1), axis=0)           # (S*Bk, H)
    xinj = jnp.pad(x0, ((0, 0), (0, (L - 1) * H)))                  # (S*Bk, L*H)

    # Block matrix: diagonal blocks W_hh^l.T ; superdiagonal (l-1 -> l) W_ih^l.T.
    wbig = jnp.zeros((L * H, L * H), jnp.float32)
    for l in range(L):
        wbig = wbig.at[l * H:(l + 1) * H, l * H:(l + 1) * H].set(rnn[l][1].T)
        if l > 0:
            wbig = wbig.at[(l - 1) * H:l * H, l * H:(l + 1) * H].set(rnn[l][0].T)
    bbig = jnp.concatenate([rnn[l][2] + rnn[l][3]
                            for l in range(L)]).reshape(1, L * H)

    # Initial wavefront state: (Bk, L*H), block l = hidden_state[l].
    h0_wave = jnp.transpose(hidden_state, (1, 0, 2)).reshape(bk, L * H)

    # Decoder weight/bias padded to a lane-dense (multiple-of-128) output width.
    out_pad = ((out_dim + 127) // 128) * 128
    wdec_pad = jnp.zeros((H, out_pad), jnp.float32).at[:, :out_dim].set(w_dec.T)
    bdec_pad = jnp.zeros((1, out_pad), jnp.float32).at[:, :out_dim].set(b_dec)

    out2d, hT = _rnn_forward_wavefront(
        xinj, wbig, bbig, h0_wave, wdec_pad, bdec_pad,
        seq=seq, batch=bk, hidden=H, num_layers=L, out_pad=out_pad)

    out = out2d.reshape(seq, bk, out_pad)[:, :batch, :out_dim]
    new_hidden_state = hT[:, :batch, :]
    return out, new_hidden_state


# ----------------------------------------------------------------------------
# Pure-JAX reference (for correctness check)
# ----------------------------------------------------------------------------
def my_rnn_forward_ref(input_seq, params, hidden_state, *, input_size):
    x = jax.nn.one_hot(input_seq, input_size, dtype=jnp.float32)
    new_states = []
    for l, (w_ih, w_hh, b_ih, b_hh) in enumerate(params["rnn"]):
        def step(h, x_t, w_ih=w_ih, w_hh=w_hh, b_ih=b_ih, b_hh=b_hh):
            h_new = jnp.tanh(x_t @ w_ih.T + b_ih + h @ w_hh.T + b_hh)
            return h_new, h_new
        hT, ys = jax.lax.scan(step, hidden_state[l], x)
        x = ys
        new_states.append(hT)
    w_dec, b_dec = params["decoder"]
    out = x @ w_dec.T + b_dec
    return out, jnp.stack(new_states)


# ----------------------------------------------------------------------------
# Deterministic parameter init (uniform(-1/sqrt(H), 1/sqrt(H)), like PyTorch)
# ----------------------------------------------------------------------------
def init_params(key, input_size, output_size, hidden_size, num_layers):
    bound = 1.0 / np.sqrt(hidden_size)
    rnn_params = []
    for l in range(num_layers):
        in_dim = input_size if l == 0 else hidden_size
        key, k1, k2, k3, k4 = jax.random.split(key, 5)
        w_ih = jax.random.uniform(k1, (hidden_size, in_dim), jnp.float32, -bound, bound)
        w_hh = jax.random.uniform(k2, (hidden_size, hidden_size), jnp.float32, -bound, bound)
        b_ih = jax.random.uniform(k3, (hidden_size,), jnp.float32, -bound, bound)
        b_hh = jax.random.uniform(k4, (hidden_size,), jnp.float32, -bound, bound)
        rnn_params.append((w_ih, w_hh, b_ih, b_hh))
    key, k1, k2 = jax.random.split(key, 3)
    w_dec = jax.random.uniform(k1, (output_size, hidden_size), jnp.float32, -bound, bound)
    b_dec = jax.random.uniform(k2, (output_size,), jnp.float32, -bound, bound)
    return {"rnn": rnn_params, "decoder": (w_dec, b_dec)}


if __name__ == "__main__":
    INPUT_SIZE = 16    # vocab size
    OUTPUT_SIZE = 16
    HIDDEN = 32
    NUM_LAYERS = 3
    SEQ = 8
    BATCH = 8

    key = jax.random.PRNGKey(0)
    key, k_seq = jax.random.split(key)
    input_seq = jax.random.randint(k_seq, (SEQ, BATCH), 0, INPUT_SIZE, dtype=jnp.int32)

    params = init_params(key, INPUT_SIZE, OUTPUT_SIZE, HIDDEN, NUM_LAYERS)
    # self.hidden_state = None on the first call -> zeros initial state.
    h0 = jnp.zeros((NUM_LAYERS, BATCH, HIDDEN), jnp.float32)

    fwd = jax.jit(functools.partial(my_rnn_forward, input_size=INPUT_SIZE))
    out, new_h = fwd(input_seq, params, h0)
    out = jax.block_until_ready(out)
    new_h = jax.block_until_ready(new_h)

    out_ref, new_h_ref = my_rnn_forward_ref(input_seq, params, h0,
                                            input_size=INPUT_SIZE)
    np.testing.assert_allclose(np.asarray(out), np.asarray(out_ref),
                               rtol=1e-5, atol=1e-5)
    np.testing.assert_allclose(np.asarray(new_h), np.asarray(new_h_ref),
                               rtol=1e-5, atol=1e-5)

    assert out.shape == (SEQ, BATCH, OUTPUT_SIZE)
    assert new_h.shape == (NUM_LAYERS, BATCH, HIDDEN)
    print("KERNEL_OK")
</pallas_src>

<mosaic_0001>
module attributes {stable_mosaic.version = 11 : i64} {
  func.func @_wavefront_rnn_kernel(%arg0: i32, %arg1: memref<64x96xf32, #tpu.memory_space<vmem>>, %arg2: memref<96x96xf32, #tpu.memory_space<vmem>>, %arg3: memref<1x96xf32, #tpu.memory_space<vmem>>, %arg4: memref<8x96xf32, #tpu.memory_space<vmem>>, %arg5: memref<32x128xf32, #tpu.memory_space<vmem>>, %arg6: memref<1x128xf32, #tpu.memory_space<vmem>>, %arg7: memref<64x128xf32, #tpu.memory_space<vmem>>, %arg8: memref<3x8x32xf32, #tpu.memory_space<vmem>>, %arg9: memref<64x32xf32, #tpu.memory_space<vmem>>) attributes {dimension_semantics = [#tpu.dimension_semantics<arbitrary>], iteration_bounds = array<i64: 1>, scalar_prefetch = 0 : i64, scratch_operands = 1 : i64, tpu.core_type = #tpu.core_type<tc>, window_params = [{pipeline_mode = #tpu.pipeline_mode<synchronous>, transform_indices = @transform_0, window_bounds = array<i64: 64, 96>}, {pipeline_mode = #tpu.pipeline_mode<synchronous>, transform_indices = @transform_1, window_bounds = array<i64: 96, 96>}, {pipeline_mode = #tpu.pipeline_mode<synchronous>, transform_indices = @transform_2, window_bounds = array<i64: 1, 96>}, {pipeline_mode = #tpu.pipeline_mode<synchronous>, transform_indices = @transform_3, window_bounds = array<i64: 8, 96>}, {pipeline_mode = #tpu.pipeline_mode<synchronous>, transform_indices = @transform_4, window_bounds = array<i64: 32, 128>}, {pipeline_mode = #tpu.pipeline_mode<synchronous>, transform_indices = @transform_5, window_bounds = array<i64: 1, 128>}, {pipeline_mode = #tpu.pipeline_mode<synchronous>, transform_indices = @transform_6, window_bounds = array<i64: 64, 128>}, {pipeline_mode = #tpu.pipeline_mode<synchronous>, transform_indices = @transform_7, window_bounds = array<i64: 3, 8, 32>}]} {
    %c0 = arith.constant 0 : index
    %c0_0 = arith.constant 0 : index
    %0 = vector.load %arg2[%c0, %c0_0] : memref<96x96xf32, #tpu.memory_space<vmem>>, vector<96x96xf32>
    %c0_1 = arith.constant 0 : index
    %c0_2 = arith.constant 0 : index
    %1 = vector.load %arg3[%c0_1, %c0_2] : memref<1x96xf32, #tpu.memory_space<vmem>>, vector<1x96xf32>
    %c0_3 = arith.constant 0 : index
    %c0_4 = arith.constant 0 : index
    %2 = vector.load %arg4[%c0_3, %c0_4] : memref<8x96xf32, #tpu.memory_space<vmem>>, vector<8x96xf32>
    %cst = arith.constant dense<0.000000e+00> : vector<8x96xf32>
    %3 = tpu.matmul %2, %0, %cst {dimension_numbers = #tpu.dot_dimension_numbers<[1], [0], [0], [1], [0, 0, 1, 1], [], []>} : vector<8x96xf32>, vector<96x96xf32>, vector<8x96xf32> -> vector<8x96xf32>
    %4 = vector.broadcast %1 : vector<1x96xf32> to vector<8x96xf32>
    %5 = arith.addf %3, %4 : vector<8x96xf32>
    %c0_5 = arith.constant 0 : index
    %c0_6 = arith.constant 0 : index
    %6 = vector.load %arg1[%c0_5, %c0_6] : memref<64x96xf32, #tpu.memory_space<vmem>>, vector<8x96xf32>
    %7 = arith.addf %5, %6 : vector<8x96xf32>
    %8 = math.tanh %7 : vector<8x96xf32>
    %9 = tpu.iota {dimensions = array<i32: 1>} : vector<1x96xi32>
    %c32_i32 = arith.constant 32 : i32
    %10 = vector.broadcast %c32_i32 : i32 to vector<1x96xi32>
    %11 = arith.cmpi slt, %9, %10 : vector<1x96xi32>
    %12 = vector.shape_cast %11 : vector<1x96xi1> to vector<1x96xi1>
    %13 = vector.broadcast %12 : vector<1x96xi1> to vector<8x96xi1>
    %14 = arith.select %13, %8, %2 : vector<8x96xi1>, vector<8x96xf32>
    %cst_7 = arith.constant dense<0.000000e+00> : vector<8x96xf32>
    %15 = tpu.matmul %14, %0, %cst_7 {dimension_numbers = #tpu.dot_dimension_numbers<[1], [0], [0], [1], [0, 0, 1, 1], [], []>} : vector<8x96xf32>, vector<96x96xf32>, vector<8x96xf32> -> vector<8x96xf32>
    %16 = vector.broadcast %1 : vector<1x96xf32> to vector<8x96xf32>
    %17 = arith.addf %15, %16 : vector<8x96xf32>
    %c8 = arith.constant 8 : index
    %c0_8 = arith.constant 0 : index
    %18 = vector.load %arg1[%c8, %c0_8] : memref<64x96xf32, #tpu.memory_space<vmem>>, vector<8x96xf32>
    %19 = arith.addf %17, %18 : vector<8x96xf32>
    %20 = math.tanh %19 : vector<8x96xf32>
    %21 = tpu.iota {dimensions = array<i32: 1>} : vector<1x96xi32>
    %c64_i32 = arith.constant 64 : i32
    %22 = vector.broadcast %c64_i32 : i32 to vector<1x96xi32>
    %23 = arith.cmpi slt, %21, %22 : vector<1x96xi32>
    %24 = vector.shape_cast %23 : vector<1x96xi1> to vector<1x96xi1>
    %25 = vector.broadcast %24 : vector<1x96xi1> to vector<8x96xi1>
    %26 = arith.select %25, %20, %14 : vector<8x96xi1>, vector<8x96xf32>
    %cst_9 = arith.constant dense<0.000000e+00> : vector<8x96xf32>
    %27 = tpu.matmul %26, %0, %cst_9 {dimension_numbers = #tpu.dot_dimension_numbers<[1], [0], [0], [1], [0, 0, 1, 1], [], []>} : vector<8x96xf32>, vector<96x96xf32>, vector<8x96xf32> -> vector<8x96xf32>
    %28 = vector.broadcast %1 : vector<1x96xf32> to vector<8x96xf32>
    %29 = arith.addf %27, %28 : vector<8x96xf32>
    %c16 = arith.constant 16 : index
    %c0_10 = arith.constant 0 : index
    %30 = vector.load %arg1[%c16, %c0_10] : memref<64x96xf32, #tpu.memory_space<vmem>>, vector<8x96xf32>
    %31 = arith.addf %29, %30 : vector<8x96xf32>
    %32 = math.tanh %31 : vector<8x96xf32>
    %33 = vector.extract_strided_slice %32 {offsets = [0, 64], sizes = [8, 32], strides = [1, 1]} : vector<8x96xf32> to vector<8x32xf32>
    %c0_11 = arith.constant 0 : index
    %c0_12 = arith.constant 0 : index
    %34 = vector.load %arg9[%c0_11, %c0_12] : memref<64x32xf32, #tpu.memory_space<vmem>>, vector<8x32xf32>
    tpu.vector_store %arg9[%c0_11, %c0_12], %33 {strides = array<i32>} : memref<64x32xf32, #tpu.memory_space<vmem>>, vector<8x32xf32>,
    %cst_13 = arith.constant dense<0.000000e+00> : vector<8x96xf32>
    %35 = tpu.matmul %32, %0, %cst_13 {dimension_numbers = #tpu.dot_dimension_numbers<[1], [0], [0], [1], [0, 0, 1, 1], [], []>} : vector<8x96xf32>, vector<96x96xf32>, vector<8x96xf32> -> vector<8x96xf32>
    %36 = vector.broadcast %1 : vector<1x96xf32> to vector<8x96xf32>
    %37 = arith.addf %35, %36 : vector<8x96xf32>
    %c24 = arith.constant 24 : index
    %c0_14 = arith.constant 0 : index
    %38 = vector.load %arg1[%c24, %c0_14] : memref<64x96xf32, #tpu.memory_space<vmem>>, vector<8x96xf32>
    %39 = arith.addf %37, %38 : vector<8x96xf32>
    %40 = math.tanh %39 : vector<8x96xf32>
    %41 = vector.extract_strided_slice %40 {offsets = [0, 64], sizes = [8, 32], strides = [1, 1]} : vector<8x96xf32> to vector<8x32xf32>
    %c8_15 = arith.constant 8 : index
    %c0_16 = arith.constant 0 : index
    %42 = vector.load %arg9[%c8_15, %c0_16] : memref<64x32xf32, #tpu.memory_space<vmem>>, vector<8x32xf32>
    tpu.vector_store %arg9[%c8_15, %c0_16], %41 {strides = array<i32>} : memref<64x32xf32, #tpu.memory_space<vmem>>, vector<8x32xf32>,
    %cst_17 = arith.constant dense<0.000000e+00> : vector<8x96xf32>
    %43 = tpu.matmul %40, %0, %cst_17 {dimension_numbers = #tpu.dot_dimension_numbers<[1], [0], [0], [1], [0, 0, 1, 1], [], []>} : vector<8x96xf32>, vector<96x96xf32>, vector<8x96xf32> -> vector<8x96xf32>
    %44 = vector.broadcast %1 : vector<1x96xf32> to vector<8x96xf32>
    %45 = arith.addf %43, %44 : vector<8x96xf32>
    %c32 = arith.constant 32 : index
    %c0_18 = arith.constant 0 : index
    %46 = vector.load %arg1[%c32, %c0_18] : memref<64x96xf32, #tpu.memory_space<vmem>>, vector<8x96xf32>
    %47 = arith.addf %45, %46 : vector<8x96xf32>
    %48 = math.tanh %47 : vector<8x96xf32>
    %49 = vector.extract_strided_slice %48 {offsets = [0, 64], sizes = [8, 32], strides = [1, 1]} : vector<8x96xf32> to vector<8x32xf32>
    %c16_19 = arith.constant 16 : index
    %c0_20 = arith.constant 0 : index
    %50 = vector.load %arg9[%c16_19, %c0_20] : memref<64x32xf32, #tpu.memory_space<vmem>>, vector<8x32xf32>
    tpu.vector_store %arg9[%c16_19, %c0_20], %49 {strides = array<i32>} : memref<64x32xf32, #tpu.memory_space<vmem>>, vector<8x32xf32>,
    %cst_21 = arith.constant dense<0.000000e+00> : vector<8x96xf32>
    %51 = tpu.matmul %48, %0, %cst_21 {dimension_numbers = #tpu.dot_dimension_numbers<[1], [0], [0], [1], [0, 0, 1, 1], [], []>} : vector<8x96xf32>, vector<96x96xf32>, vector<8x96xf32> -> vector<8x96xf32>
    %52 = vector.broadcast %1 : vector<1x96xf32> to vector<8x96xf32>
    %53 = arith.addf %51, %52 : vector<8x96xf32>
    %c40 = arith.constant 40 : index
    %c0_22 = arith.constant 0 : index
    %54 = vector.load %arg1[%c40, %c0_22] : memref<64x96xf32, #tpu.memory_space<vmem>>, vector<8x96xf32>
    %55 = arith.addf %53, %54 : vector<8x96xf32>
    %56 = math.tanh %55 : vector<8x96xf32>
    %57 = vector.extract_strided_slice %56 {offsets = [0, 64], sizes = [8, 32], strides = [1, 1]} : vector<8x96xf32> to vector<8x32xf32>
    %c24_23 = arith.constant 24 : index
    %c0_24 = arith.constant 0 : index
    %58 = vector.load %arg9[%c24_23, %c0_24] : memref<64x32xf32, #tpu.memory_space<vmem>>, vector<8x32xf32>
    tpu.vector_store %arg9[%c24_23, %c0_24], %57 {strides = array<i32>} : memref<64x32xf32, #tpu.memory_space<vmem>>, vector<8x32xf32>,
    %cst_25 = arith.constant dense<0.000000e+00> : vector<8x96xf32>
    %59 = tpu.matmul %56, %0, %cst_25 {dimension_numbers = #tpu.dot_dimension_numbers<[1], [0], [0], [1], [0, 0, 1, 1], [], []>} : vector<8x96xf32>, vector<96x96xf32>, vector<8x96xf32> -> vector<8x96xf32>
    %60 = vector.broadcast %1 : vector<1x96xf32> to vector<8x96xf32>
    %61 = arith.addf %59, %60 : vector<8x96xf32>
    %c48 = arith.constant 48 : index
    %c0_26 = arith.constant 0 : index
    %62 = vector.load %arg1[%c48, %c0_26] : memref<64x96xf32, #tpu.memory_space<vmem>>, vector<8x96xf32>
    %63 = arith.addf %61, %62 : vector<8x96xf32>
    %64 = math.tanh %63 : vector<8x96xf32>
    %65 = vector.extract_strided_slice %64 {offsets = [0, 64], sizes = [8, 32], strides = [1, 1]} : vector<8x96xf32> to vector<8x32xf32>
    %c32_27 = arith.constant 32 : index
    %c0_28 = arith.constant 0 : index
    %66 = vector.load %arg9[%c32_27, %c0_28] : memref<64x32xf32, #tpu.memory_space<vmem>>, vector<8x32xf32>
    tpu.vector_store %arg9[%c32_27, %c0_28], %65 {strides = array<i32>} : memref<64x32xf32, #tpu.memory_space<vmem>>, vector<8x32xf32>,
    %cst_29 = arith.constant dense<0.000000e+00> : vector<8x96xf32>
    %67 = tpu.matmul %64, %0, %cst_29 {dimension_numbers = #tpu.dot_dimension_numbers<[1], [0], [0], [1], [0, 0, 1, 1], [], []>} : vector<8x96xf32>, vector<96x96xf32>, vector<8x96xf32> -> vector<8x96xf32>
    %68 = vector.broadcast %1 : vector<1x96xf32> to vector<8x96xf32>
    %69 = arith.addf %67, %68 : vector<8x96xf32>
    %c56 = arith.constant 56 : index
    %c0_30 = arith.constant 0 : index
    %70 = vector.load %arg1[%c56, %c0_30] : memref<64x96xf32, #tpu.memory_space<vmem>>, vector<8x96xf32>
    %71 = arith.addf %69, %70 : vector<8x96xf32>
    %72 = math.tanh %71 : vector<8x96xf32>
    %73 = vector.extract_strided_slice %72 {offsets = [0, 0], sizes = [8, 32], strides = [1, 1]} : vector<8x96xf32> to vector<8x32xf32>
    %c0_31 = arith.constant 0 : index
    %c0_32 = arith.constant 0 : index
    %c0_33 = arith.constant 0 : index
    %74 = vector.load %arg8[%c0_31, %c0_32, %c0_33] : memref<3x8x32xf32, #tpu.memory_space<vmem>>, vector<1x8x32xf32>
    %75 = vector.shape_cast %74 : vector<1x8x32xf32> to vector<8x32xf32>
    %76 = vector.shape_cast %73 : vector<8x32xf32> to vector<1x8x32xf32>
    tpu.vector_store %arg8[%c0_31, %c0_32, %c0_33], %76 {strides = array<i32>} : memref<3x8x32xf32, #tpu.memory_space<vmem>>, vector<1x8x32xf32>,
    %77 = vector.extract_strided_slice %72 {offsets = [0, 64], sizes = [8, 32], strides = [1, 1]} : vector<8x96xf32> to vector<8x32xf32>
    %c40_34 = arith.constant 40 : index
    %c0_35 = arith.constant 0 : index
    %78 = vector.load %arg9[%c40_34, %c0_35] : memref<64x32xf32, #tpu.memory_space<vmem>>, vector<8x32xf32>
    tpu.vector_store %arg9[%c40_34, %c0_35], %77 {strides = array<i32>} : memref<64x32xf32, #tpu.memory_space<vmem>>, vector<8x32xf32>,
    %cst_36 = arith.constant dense<0.000000e+00> : vector<8x96xf32>
    %79 = tpu.matmul %72, %0, %cst_36 {dimension_numbers = #tpu.dot_dimension_numbers<[1], [0], [0], [1], [0, 0, 1, 1], [], []>} : vector<8x96xf32>, vector<96x96xf32>, vector<8x96xf32> -> vector<8x96xf32>
    %80 = vector.broadcast %1 : vector<1x96xf32> to vector<8x96xf32>
    %81 = arith.addf %79, %80 : vector<8x96xf32>
    %82 = math.tanh %81 : vector<8x96xf32>
    %83 = vector.extract_strided_slice %82 {offsets = [0, 32], sizes = [8, 32], strides = [1, 1]} : vector<8x96xf32> to vector<8x32xf32>
    %c1 = arith.constant 1 : index
    %c0_37 = arith.constant 0 : index
    %c0_38 = arith.constant 0 : index
    %84 = vector.load %arg8[%c1, %c0_37, %c0_38] : memref<3x8x32xf32, #tpu.memory_space<vmem>>, vector<1x8x32xf32>
    %85 = vector.shape_cast %84 : vector<1x8x32xf32> to vector<8x32xf32>
    %86 = vector.shape_cast %83 : vector<8x32xf32> to vector<1x8x32xf32>
    tpu.vector_store %arg8[%c1, %c0_37, %c0_38], %86 {strides = array<i32>} : memref<3x8x32xf32, #tpu.memory_space<vmem>>, vector<1x8x32xf32>,
    %87 = vector.extract_strided_slice %82 {offsets = [0, 64], sizes = [8, 32], strides = [1, 1]} : vector<8x96xf32> to vector<8x32xf32>
    %c48_39 = arith.constant 48 : index
    %c0_40 = arith.constant 0 : index
    %88 = vector.load %arg9[%c48_39, %c0_40] : memref<64x32xf32, #tpu.memory_space<vmem>>, vector<8x32xf32>
    tpu.vector_store %arg9[%c48_39, %c0_40], %87 {strides = array<i32>} : memref<64x32xf32, #tpu.memory_space<vmem>>, vector<8x32xf32>,
    %cst_41 = arith.constant dense<0.000000e+00> : vector<8x96xf32>
    %89 = tpu.matmul %82, %0, %cst_41 {dimension_numbers = #tpu.dot_dimension_numbers<[1], [0], [0], [1], [0, 0, 1, 1], [], []>} : vector<8x96xf32>, vector<96x96xf32>, vector<8x96xf32> -> vector<8x96xf32>
    %90 = vector.broadcast %1 : vector<1x96xf32> to vector<8x96xf32>
    %91 = arith.addf %89, %90 : vector<8x96xf32>
    %92 = math.tanh %91 : vector<8x96xf32>
    %93 = vector.extract_strided_slice %92 {offsets = [0, 64], sizes = [8, 32], strides = [1, 1]} : vector<8x96xf32> to vector<8x32xf32>
    %c2 = arith.constant 2 : index
    %c0_42 = arith.constant 0 : index
    %c0_43 = arith.constant 0 : index
    %94 = vector.load %arg8[%c2, %c0_42, %c0_43] : memref<3x8x32xf32, #tpu.memory_space<vmem>>, vector<1x8x32xf32>
    %95 = vector.shape_cast %94 : vector<1x8x32xf32> to vector<8x32xf32>
    %96 = vector.shape_cast %93 : vector<8x32xf32> to vector<1x8x32xf32>
    tpu.vector_store %arg8[%c2, %c0_42, %c0_43], %96 {strides = array<i32>} : memref<3x8x32xf32, #tpu.memory_space<vmem>>, vector<1x8x32xf32>,
    %97 = vector.extract_strided_slice %92 {offsets = [0, 64], sizes = [8, 32], strides = [1, 1]} : vector<8x96xf32> to vector<8x32xf32>
    %c56_44 = arith.constant 56 : index
    %c0_45 = arith.constant 0 : index
    %98 = vector.load %arg9[%c56_44, %c0_45] : memref<64x32xf32, #tpu.memory_space<vmem>>, vector<8x32xf32>
    tpu.vector_store %arg9[%c56_44, %c0_45], %97 {strides = array<i32>} : memref<64x32xf32, #tpu.memory_space<vmem>>, vector<8x32xf32>,
    %c0_46 = arith.constant 0 : index
    %c0_47 = arith.constant 0 : index
    %99 = vector.load %arg9[%c0_46, %c0_47] : memref<64x32xf32, #tpu.memory_space<vmem>>, vector<64x32xf32>
    %c0_48 = arith.constant 0 : index
    %c0_49 = arith.constant 0 : index
    %100 = vector.load %arg5[%c0_48, %c0_49] : memref<32x128xf32, #tpu.memory_space<vmem>>, vector<32x128xf32>
    %cst_50 = arith.constant dense<0.000000e+00> : vector<64x128xf32>
    %101 = tpu.matmul %99, %100, %cst_50 {dimension_numbers = #tpu.dot_dimension_numbers<[1], [0], [0], [1], [0, 0, 1, 1], [], []>} : vector<64x32xf32>, vector<32x128xf32>, vector<64x128xf32> -> vector<64x128xf32>
    %c0_51 = arith.constant 0 : index
    %c0_52 = arith.constant 0 : index
    %102 = vector.load %arg6[%c0_51, %c0_52] : memref<1x128xf32, #tpu.memory_space<vmem>>, vector<1x128xf32>
    %103 = vector.broadcast %102 : vector<1x128xf32> to vector<64x128xf32>
    %104 = arith.addf %101, %103 : vector<64x128xf32>
    %c0_53 = arith.constant 0 : index
    %c0_54 = arith.constant 0 : index
    %105 = vector.load %arg7[%c0_53, %c0_54] : memref<64x128xf32, #tpu.memory_space<vmem>>, vector<64x128xf32>
    tpu.vector_store %arg7[%c0_53, %c0_54], %104 {strides = array<i32>} : memref<64x128xf32, #tpu.memory_space<vmem>>, vector<64x128xf32>,
    return
  }
  func.func @transform_0(%arg0: i32) -> (i32, i32) {
    %c0_i32 = arith.constant 0 : i32
    %c0_i32_0 = arith.constant 0 : i32
    %c0_i32_1 = arith.constant 0 : i32
    return %c0_i32, %c0_i32_0 : i32, i32
  }
  func.func @transform_1(%arg0: i32) -> (i32, i32) {
    %c0_i32 = arith.constant 0 : i32
    %c0_i32_0 = arith.constant 0 : i32
    %c0_i32_1 = arith.constant 0 : i32
    return %c0_i32, %c0_i32_0 : i32, i32
  }
  func.func @transform_2(%arg0: i32) -> (i32, i32) {
    %c0_i32 = arith.constant 0 : i32
    %c0_i32_0 = arith.constant 0 : i32
    %c0_i32_1 = arith.constant 0 : i32
    return %c0_i32, %c0_i32_0 : i32, i32
  }
  func.func @transform_3(%arg0: i32) -> (i32, i32) {
    %c0_i32 = arith.constant 0 : i32
    %c0_i32_0 = arith.constant 0 : i32
    %c0_i32_1 = arith.constant 0 : i32
    return %c0_i32, %c0_i32_0 : i32, i32
  }
  func.func @transform_4(%arg0: i32) -> (i32, i32) {
    %c0_i32 = arith.constant 0 : i32
    %c0_i32_0 = arith.constant 0 : i32
    %c0_i32_1 = arith.constant 0 : i32
    return %c0_i32, %c0_i32_0 : i32, i32
  }
  func.func @transform_5(%arg0: i32) -> (i32, i32) {
    %c0_i32 = arith.constant 0 : i32
    %c0_i32_0 = arith.constant 0 : i32
    %c0_i32_1 = arith.constant 0 : i32
    return %c0_i32, %c0_i32_0 : i32, i32
  }
  func.func @transform_6(%arg0: i32) -> (i32, i32) {
    %c0_i32 = arith.constant 0 : i32
    %c0_i32_0 = arith.constant 0 : i32
    %c0_i32_1 = arith.constant 0 : i32
    return %c0_i32, %c0_i32_0 : i32, i32
  }
  func.func @transform_7(%arg0: i32) -> (i32, i32, i32) {
    %c0_i32 = arith.constant 0 : i32
    %c0_i32_0 = arith.constant 0 : i32
    %c0_i32_1 = arith.constant 0 : i32
    %c0_i32_2 = arith.constant 0 : i32
    return %c0_i32, %c0_i32_0, %c0_i32_1 : i32, i32, i32
  }
}

</mosaic_0001>

<bundles_post_ra>
// kernel: my_rnn_forward.1
= control target key start
LH: loop header
LB: loop body
LE: loop exit
PB: predicated region body
PF: predicated region fallthrough
CT: control target
= control target key end

     0   :  { %13 = vsyncpa [#allocation4], 0  ;;  %s920_s0 = inlined_call_operand.vmem [shape: f32[64,96], index: 0, kind: input, shape index: {}]   ;;  %s921_s1 = inlined_call_operand.vmem [shape: f32[96,96], index: 1, kind: input, shape index: {}]   ;;  %s922_s2 = inlined_call_operand.vmem [shape: f32[1,96], index: 2, kind: input, shape index: {}]   ;;  %s923_s3 = inlined_call_operand.vmem [shape: f32[8,96], index: 3, kind: input, shape index: {}]   ;;  %s924_s4 = inlined_call_operand.vmem [shape: f32[32,128], index: 4, kind: input, shape index: {}]   ;;  %s925_s5 = inlined_call_operand.vmem [shape: f32[1,128], index: 5, kind: input, shape index: {}]   ;;  %s926_s6 = inlined_call_operand.hbm [shape: f32[64,128], index: 6, kind: output, shape index: {0}]   ;;  %s927_s7 = inlined_call_operand.hbm [shape: f32[3,8,32], index: 7, kind: output, shape index: {1}]  }
   0x1   :  { %v629_v0 = vld [vmem:[%s921_s1 + $0x58] sm:$0xff]  ;;  %v634_v1 = vld [vmem:[%s921_s1 + $0x50] sm:$0xff]  ;;  %v641_v2 = vld [vmem:[%s921_s1 + $0x48] sm:$0xff] }
   0x2   :  { %52 = vmatpush.msra.mxu0 %v629_v0  ;;  %84 = vmatpush.msra.mxu1 %v629_v0  ;;  %v650_v3 = vld [vmem:[%s921_s1 + $0x40] sm:$0xff] }
   0x3   :  { %114 = vmatpush.msra.mxu2 %v629_v0  ;;  %145 = vmatpush.msra.mxu3 %v629_v0 }
   0x4   :  { %53 = vmatpush.msra.mxu0 %v634_v1  ;;  %85 = vmatpush.msra.mxu1 %v634_v1 }
   0x5   :  { %115 = vmatpush.msra.mxu2 %v634_v1  ;;  %146 = vmatpush.msra.mxu3 %v634_v1 }
   0x6   :  { %54 = vmatpush.msra.mxu0 %v641_v2  ;;  %86 = vmatpush.msra.mxu1 %v641_v2 }
   0x7   :  { %14 = vsyncpa [#allocation6], 0  ;;  %v659_v4 = vld [vmem:[%s921_s1 + $0x38] sm:$0xff]  ;;  %116 = vmatpush.msra.mxu2 %v641_v2  ;;  %147 = vmatpush.msra.mxu3 %v641_v2  ;;  %v668_v5 = vld [vmem:[%s921_s1 + $0x30] sm:$0xff]  ;;  %vm44_vm0 = vcmask 785408   ;;  %v71_v17 = vlaneseq  ;;  %s580_s9 = smov 64  }
   0x8   :  { %55 = vmatpush.msra.mxu0 %v650_v3  ;;  %87 = vmatpush.msra.mxu1 %v650_v3  ;;  %v677_v6 = vld [vmem:[%s921_s1 + $0x28] sm:$0xff]  ;;  %v686_v7 = vld [vmem:[%s921_s1 + $0x20] sm:$0xff]  ;;  %v695_v8 = vld [vmem:[%s921_s1 + $0x18] sm:$0xff]  ;;  %vm137_vm3 = vcmask 261120   ;;  %s461_s29 = sshll.u32 %s927_s7, 4  ;;  %s583_s30 = smov 128   ;;  %s462_s29 = int_to_ptr.hbm [resolvable:$true] %s461_s29 }
   0x9   :  { %117 = vmatpush.msra.mxu2 %v650_v3  ;;  %148 = vmatpush.msra.mxu3 %v650_v3  ;;  %v704_v9 = vld [vmem:[%s921_s1 + $0x10] sm:$0xff]  ;;  %v713_v10 = vld [vmem:[%s921_s1 + $0x8] sm:$0xff]  ;;  %v722_v11 = vld [vmem:[%s921_s1] sm:$0xff]  ;;  %v72_v19 = vand.u32 127, %v71_v17  ;;  %s584_s8 = smov 8   ;;  %s448_s13 = sshll.u32 %s926_s6, 4  ;;  %s449_s13 = int_to_ptr.hbm [resolvable:$true] %s448_s13 }
   0xa   :  { %56 = vmatpush.msra.mxu0 %v659_v4  ;;  %88 = vmatpush.msra.mxu1 %v659_v4  ;;  %v730_v12 = vld [vmem:[%s923_s3] sm:$0xff]  ;;  %v100_v23 = vld [vmem:[%s920_s0 + $0x8] sm:$0xff]  ;;  %v130_v29 = vld [vmem:[%s920_s0 + $0x10] sm:$0xff]  ;;  %s582_s3 = smov [#allocation5]  }
   0xb   :  { %118 = vmatpush.msra.mxu2 %v659_v4  ;;  %149 = vmatpush.msra.mxu3 %v659_v4  ;;  %v804_v13 = vld [vmem:[%s922_s2] ss:$0 sm:$0xff]  ;;  %vm73_vm1 = vcmp.lt.s32.totalorder %v72_v19, 32  ;;  %vm103_vm2 = vcmp.lt.s32.totalorder %v72_v19, 64  ;;  %v161_v35 = vld [vmem:[%s920_s0 + $0x18] sm:$0xff]  ;;  %v363_v47 = vld [vmem:[%s924_s4 + $0x10] sm:$0xff] }
   0xc   :  { %57 = vmatpush.msra.mxu0 %v668_v5  ;;  %89 = vmatpush.msra.mxu1 %v668_v5  ;;  %v68_v15 = vld [vmem:[%s920_s0] sm:$0xff]  ;;  %v364_v46 = vld [vmem:[%s924_s4 + $0x18] sm:$0xff]  ;;  %v362_v48 = vld [vmem:[%s924_s4 + $0x8] sm:$0xff]  ;;  %s459_s27 = sshll.u32 %s582_s3, 4  ;;  %s460_s27 = int_to_ptr.vmem [resolvable:$true] %s459_s27 }
   0xd   :  { %119 = vmatpush.msra.mxu2 %v668_v5  ;;  %150 = vmatpush.msra.mxu3 %v668_v5  ;;  %v191_v41 = vld [vmem:[%s920_s0 + $0x20] sm:$0xff]  ;;  %v221_v51 = vld [vmem:[%s920_s0 + $0x28] sm:$0xff]  ;;  %v251_v59 = vld [vmem:[%s920_s0 + $0x30] sm:$0xff] }
   0xe   :  { %58 = vmatpush.msra.mxu0 %v677_v6  ;;  %90 = vmatpush.msra.mxu1 %v677_v6  ;;  %v361_v49 = vld [vmem:[%s924_s4] sm:$0xff] }
   0xf   :  { %120 = vmatpush.msra.mxu2 %v677_v6  ;;  %151 = vmatpush.msra.mxu3 %v677_v6  ;;  %v877_v62 = vld [vmem:[%s925_s5] ss:$0 sm:$0xff] }
  0x10   :  { %59 = vmatpush.msra.mxu0 %v686_v7  ;;  %91 = vmatpush.msra.mxu1 %v686_v7 }
  0x11   :  { %121 = vmatpush.msra.mxu2 %v686_v7  ;;  %152 = vmatpush.msra.mxu3 %v686_v7 }
  0x12   :  { %60 = vmatpush.msra.mxu0 %v695_v8  ;;  %92 = vmatpush.msra.mxu1 %v695_v8 }
  0x13   :  { %122 = vmatpush.msra.mxu2 %v695_v8  ;;  %153 = vmatpush.msra.mxu3 %v695_v8 }
  0x14   :  { %61 = vmatpush.msra.mxu0 %v704_v9  ;;  %93 = vmatpush.msra.mxu1 %v704_v9 }
  0x15   :  { %123 = vmatpush.msra.mxu2 %v704_v9  ;;  %154 = vmatpush.msra.mxu3 %v704_v9 }
  0x16   :  { %62 = vmatpush.msra.mxu0 %v713_v10  ;;  %94 = vmatpush.msra.mxu1 %v713_v10 }
  0x17   :  { %124 = vmatpush.msra.mxu2 %v713_v10  ;;  %155 = vmatpush.msra.mxu3 %v713_v10 }
  0x18   :  { %63 = vmatpush.msra.mxu0 %v722_v11  ;;  %95 = vmatpush.msra.mxu1 %v722_v11 }
  0x19   :  { %478 = vmatmul.msk.f32.vlgmr.msra.gmra.mxu0 %vm44_vm0, %v730_v12  ;;  %125 = vmatpush.msra.mxu2 %v722_v11 }
  0x1a   :  { %156 = vmatpush.msra.mxu3 %v722_v11  ;;  %175 = vmatpush.msrb.mxu0 %v629_v0 }
  0x1b   :  { %205 = vmatpush.msrb.mxu1 %v629_v0  ;;  %235 = vmatpush.msrb.mxu2 %v629_v0 }
  0x1c   :  { %176 = vmatpush.msrb.mxu0 %v634_v1  ;;  %265 = vmatpush.msrb.mxu3 %v629_v0 }
  0x1d   :  { %206 = vmatpush.msrb.mxu1 %v634_v1  ;;  %236 = vmatpush.msrb.mxu2 %v634_v1 }
  0x1e   :  { %177 = vmatpush.msrb.mxu0 %v641_v2  ;;  %266 = vmatpush.msrb.mxu3 %v634_v1 }
  0x1f   :  { %207 = vmatpush.msrb.mxu1 %v641_v2  ;;  %237 = vmatpush.msrb.mxu2 %v641_v2 }
  0x20   :  { %178 = vmatpush.msrb.mxu0 %v650_v3  ;;  %267 = vmatpush.msrb.mxu3 %v641_v2 }
  0x21   :  { %208 = vmatpush.msrb.mxu1 %v650_v3  ;;  %238 = vmatpush.msrb.mxu2 %v650_v3 }
  0x22   :  { %179 = vmatpush.msrb.mxu0 %v659_v4  ;;  %268 = vmatpush.msrb.mxu3 %v650_v3 }
  0x23   :  { %209 = vmatpush.msrb.mxu1 %v659_v4  ;;  %239 = vmatpush.msrb.mxu2 %v659_v4 }
  0x24   :  { %180 = vmatpush.msrb.mxu0 %v668_v5  ;;  %269 = vmatpush.msrb.mxu3 %v659_v4 }
  0x25   :  { %210 = vmatpush.msrb.mxu1 %v668_v5  ;;  %240 = vmatpush.msrb.mxu2 %v668_v5 }
  0x26   :  { %181 = vmatpush.msrb.mxu0 %v677_v6  ;;  %270 = vmatpush.msrb.mxu3 %v668_v5 }
  0x27   :  { %211 = vmatpush.msrb.mxu1 %v677_v6  ;;  %241 = vmatpush.msrb.mxu2 %v677_v6 }
  0x28   :  { %182 = vmatpush.msrb.mxu0 %v686_v7  ;;  %271 = vmatpush.msrb.mxu3 %v677_v6 }
  0x29   :  { %212 = vmatpush.msrb.mxu1 %v686_v7  ;;  %242 = vmatpush.msrb.mxu2 %v686_v7 }
  0x2a   :  { %183 = vmatpush.msrb.mxu0 %v695_v8  ;;  %272 = vmatpush.msrb.mxu3 %v686_v7 }
  0x2b   :  { %213 = vmatpush.msrb.mxu1 %v695_v8  ;;  %243 = vmatpush.msrb.mxu2 %v695_v8 }
  0x2c   :  { %184 = vmatpush.msrb.mxu0 %v704_v9  ;;  %273 = vmatpush.msrb.mxu3 %v695_v8 }
  0x2d   :  { %214 = vmatpush.msrb.mxu1 %v704_v9  ;;  %244 = vmatpush.msrb.mxu2 %v704_v9 }
  0x2e   :  { %185 = vmatpush.msrb.mxu0 %v713_v10  ;;  %274 = vmatpush.msrb.mxu3 %v704_v9 }
  0x2f   :  { %215 = vmatpush.msrb.mxu1 %v713_v10  ;;  %245 = vmatpush.msrb.mxu2 %v713_v10 }
  0x30   :  { %186 = vmatpush.msrb.mxu0 %v722_v11  ;;  %275 = vmatpush.msrb.mxu3 %v713_v10 }
  0x31   :  { %216 = vmatpush.msrb.mxu1 %v722_v11  ;;  %246 = vmatpush.msrb.mxu2 %v722_v11 }
  0x32   :  { %276 = vmatpush.msrb.mxu3 %v722_v11  ;;  %296 = vmatpush.msra.mxu0 %v629_v0 }
  0x34   :  { %297 = vmatpush.msra.mxu0 %v634_v1 }
  0x36   :  { %298 = vmatpush.msra.mxu0 %v641_v2 }
  0x38   :  { %299 = vmatpush.msra.mxu0 %v650_v3 }
  0x3a   :  { %300 = vmatpush.msra.mxu0 %v659_v4 }
  0x3c   :  { %301 = vmatpush.msra.mxu0 %v668_v5 }
  0x3e   :  { %302 = vmatpush.msra.mxu0 %v677_v6 }
  0x40   :  { %303 = vmatpush.msra.mxu0 %v686_v7 }
  0x42   :  { %304 = vmatpush.msra.mxu0 %v695_v8 }
  0x44   :  { %305 = vmatpush.msra.mxu0 %v704_v9 }
  0x46   :  { %306 = vmatpush.msra.mxu0 %v713_v10 }
  0x48   :  { %307 = vmatpush.msra.mxu0 %v722_v11 }
  0x96   :  { %v65_v14 = vpop.f32.mrf.mxu0 }
  0x97   :  { %v66_v16 = vadd.f32 %v804_v13, %v65_v14 }
  0x99   :  { %v69_v18 = vadd.f32 %v68_v15, %v66_v16 }
  0x9b   :  { %508 = vtanh.f32 %v69_v18 }
  0xa1   :  { %v509_v20 = vpop.eup %508 }
  0xa2   :  { %v76_v21 = vsel %vm73_vm1, %v509_v20, %v730_v12 }
  0xa3   :  { %479 = vmatmul.msk.f32.vlgmr.msra.gmra.mxu1 %vm44_vm0, %v76_v21 }
  0xa4   :  { %329 = vmatpush.msra.mxu1 %v629_v0 }
  0xa6   :  { %330 = vmatpush.msra.mxu1 %v634_v1 }
  0xa8   :  { %331 = vmatpush.msra.mxu1 %v641_v2 }
  0xaa   :  { %332 = vmatpush.msra.mxu1 %v650_v3 }
  0xac   :  { %333 = vmatpush.msra.mxu1 %v659_v4 }
  0xae   :  { %334 = vmatpush.msra.mxu1 %v668_v5 }
  0xb0   :  { %335 = vmatpush.msra.mxu1 %v677_v6 }
  0xb2   :  { %336 = vmatpush.msra.mxu1 %v686_v7 }
  0xb4   :  { %337 = vmatpush.msra.mxu1 %v695_v8 }
  0xb6   :  { %338 = vmatpush.msra.mxu1 %v704_v9 }
  0xb8   :  { %339 = vmatpush.msra.mxu1 %v713_v10 }
  0xba   :  { %340 = vmatpush.msra.mxu1 %v722_v11  ;;  %v281_v11 = vld [vmem:[%s920_s0 + $0x38] sm:$0xff]  ;;  %s581_s0 = smov 96  }
 0x120   :  { %v97_v22 = vpop.f32.mrf.mxu1 }
 0x121   :  { %v98_v24 = vadd.f32 %v804_v13, %v97_v22 }
 0x123   :  { %v101_v25 = vadd.f32 %v100_v23, %v98_v24 }
 0x125   :  { %510 = vtanh.f32 %v101_v25 }
 0x12b   :  { %v511_v26 = vpop.eup %510 }
 0x12c   :  { %v106_v27 = vsel %vm103_vm2, %v511_v26, %v76_v21 }
 0x12d   :  { %480 = vmatmul.msk.f32.vlgmr.msra.gmra.mxu2 %vm44_vm0, %v106_v27 }
 0x12e   :  { %405 = vmatpush.msra.mxu2 %v364_v46 }
 0x130   :  { %406 = vmatpush.msra.mxu2 %v363_v47 }
 0x132   :  { %407 = vmatpush.msra.mxu2 %v362_v48 }
 0x134   :  { %408 = vmatpush.msra.mxu2 %v361_v49 }
 0x1b0   :  { %v127_v28 = vpop.f32.mrf.mxu2 }
 0x1b1   :  { %v128_v30 = vadd.f32 %v804_v13, %v127_v28 }
 0x1b3   :  { %v131_v31 = vadd.f32 %v130_v29, %v128_v30 }
 0x1b5   :  { %512 = vtanh.f32 %v131_v31 }
 0x1bb   :  { %v513_v32 = vpop.eup %512 }
 0x1bc   :  { %134 = vrot.lane.b32.xlu0 %v513_v32, %s580_s9  ;;  %481 = vmatmul.msk.f32.vlgmr.msra.gmra.mxu3 %vm44_vm0, %v513_v32 }
 0x1bd   :  { %496 = vmatpush.msra.mxu3 %v364_v46 }
 0x1bf   :  { %497 = vmatpush.msra.mxu3 %v363_v47 }
 0x1c1   :  { %498 = vmatpush.msra.mxu3 %v362_v48 }
 0x1c3   :  { %499 = vmatpush.msra.mxu3 %v361_v49 }
 0x22e   :  { %v135_v33 = vpop.permute.xlu0 %134 }
 0x22f   :  { %138 = vst.msk [vmem:[#allocation2] sm:$0xff] %vm137_vm3, %v135_v33 }
 0x236   :  { %v353_v55 = vld [vmem:[#allocation2] sm:$0xff] }
 0x23f   :  { %v158_v34 = vpop.f32.mrf.mxu3 }
 0x240   :  { %v159_v36 = vadd.f32 %v804_v13, %v158_v34 }
 0x242   :  { %v162_v37 = vadd.f32 %v161_v35, %v159_v36 }
 0x244   :  { %514 = vtanh.f32 %v162_v37 }
 0x24a   :  { %v515_v38 = vpop.eup %514 }
 0x24b   :  { %165 = vrot.lane.b32.xlu1 %v515_v38, %s580_s9  ;;  %482 = vmatmul.msk.f32.vlgmr.msrb.gmra.mxu0 %vm44_vm0, %v515_v38 }
 0x2bd   :  { %v166_v39 = vpop.permute.xlu1 %165 }
 0x2be   :  { %168 = vst.msk [vmem:[#allocation2 + $0x8] sm:$0xff] %vm137_vm3, %v166_v39 }
 0x2c5   :  { %v354_v56 = vld [vmem:[#allocation2 + $0x8] sm:$0xff] }
 0x2c8   :  { %v188_v40 = vpop.f32.mrf.mxu0 }
 0x2c9   :  { %v189_v42 = vadd.f32 %v804_v13, %v188_v40 }
 0x2cb   :  { %v192_v43 = vadd.f32 %v191_v41, %v189_v42 }
 0x2cd   :  { %516 = vtanh.f32 %v192_v43 }
 0x2d3   :  { %v517_v44 = vpop.eup %516 }
 0x2d4   :  { %195 = vrot.lane.b32.xlu2 %v517_v44, %s580_s9  ;;  %483 = vmatmul.msk.f32.vlgmr.msrb.gmra.mxu1 %vm44_vm0, %v517_v44 }
 0x32e   :  { %v196_v45 = vpop.permute.xlu2 %195 }
 0x32f   :  { %198 = vst.msk [vmem:[#allocation2 + $0x10] sm:$0xff] %vm137_vm3, %v196_v45 }
 0x336   :  { %v355_v57 = vld [vmem:[#allocation2 + $0x10] sm:$0xff] }
 0x351   :  { %v218_v50 = vpop.f32.mrf.mxu1 }
 0x352   :  { %v219_v52 = vadd.f32 %v804_v13, %v218_v50 }
 0x354   :  { %v222_v53 = vadd.f32 %v221_v51, %v219_v52 }
 0x356   :  { %518 = vtanh.f32 %v222_v53 }
 0x35c   :  { %v519_v54 = vpop.eup %518 }
 0x35d   :  { %484 = vmatmul.msk.f32.vlgmr.msrb.gmra.mxu2 %vm44_vm0, %v519_v54 }
 0x365   :  { %488 = vmatmul.msk.f32.vlgmr.msra.gmra.mxu2 %vm137_vm3, %v353_v55 }
 0x36d   :  { %489 = vmatmul.msk.f32.gmra.mxu2 %vm137_vm3, %v354_v56 }
 0x375   :  { %490 = vmatmul.msk.f32.gmra.mxu2 %vm137_vm3, %v355_v57 }
 0x3e0   :  { %v248_v58 = vpop.f32.mrf.mxu2 }
 0x3e1   :  { %v249_v60 = vadd.f32 %v804_v13, %v248_v58 }
 0x3e3   :  { %v252_v61 = vadd.f32 %v251_v59, %v249_v60 }
 0x3e5   :  { %520 = vtanh.f32 %v252_v61 }
 0x3e8   :  { %v410_v63 = vpop.f32.mrf.mxu2 }
 0x3e9   :  { %v411_v0 = vadd.f32 %v877_v62, %v410_v63 }
 0x3eb   :  { %v521_v1 = vpop.eup %520  ;;  %434 = vst [vmem:[#allocation3] sm:$0xff] %v411_v0 }
 0x3ec   :  { %255 = vrot.lane.b32.xlu0 %v521_v1, %s580_s9  ;;  %485 = vmatmul.msk.f32.vlgmr.msrb.gmra.mxu3 %vm44_vm0, %v521_v1 }
 0x3f0   :  { %v413_v2 = vpop.f32.mrf.mxu2 }
 0x3f1   :  { %v414_v3 = vadd.f32 %v877_v62, %v413_v2 }
 0x3f3   :  { %435 = vst [vmem:[#allocation3 + $0x8] sm:$0xff] %v414_v3 }
 0x3f4   :  { %225 = vrot.lane.b32.xlu0 %v519_v54, %s580_s9 }
 0x3f8   :  { %v416_v4 = vpop.f32.mrf.mxu2 }
 0x3f9   :  { %v417_v5 = vadd.f32 %v877_v62, %v416_v4 }
 0x3fb   :  { %436 = vst [vmem:[#allocation3 + $0x10] sm:$0xff] %v417_v5 }
 0x45e   :  { %v256_v6 = vpop.permute.xlu0 %255 }
 0x45f   :  { %258 = vst.msk [vmem:[#allocation2 + $0x20] sm:$0xff] %vm137_vm3, %v256_v6 }
 0x466   :  { %v226_v7 = vpop.permute.xlu0 %225  ;;  %v357_v8 = vld [vmem:[#allocation2 + $0x20] sm:$0xff] }
 0x467   :  { %228 = vst.msk [vmem:[#allocation2 + $0x18] sm:$0xff] %vm137_vm3, %v226_v7  ;;  %492 = vmatmul.msk.f32.vlgmr.msra.gmra.mxu3 %vm137_vm3, %v357_v8 }
 0x46e   :  { %v356_v9 = vld [vmem:[#allocation2 + $0x18] sm:$0xff] }
 0x46f   :  { %v278_v10 = vpop.f32.mrf.mxu3  ;;  %491 = vmatmul.msk.f32.gmra.mxu2 %vm137_vm3, %v356_v9 }
 0x470   :  { %v279_v12 = vadd.f32 %v804_v13, %v278_v10 }
 0x472   :  { %v282_v14 = vadd.f32 %v281_v11, %v279_v12 }
 0x474   :  { %522 = vtanh.f32 %v282_v14 }
 0x47a   :  { %v523_v15 = vpop.eup %522 }
 0x47b   :  { %284 = vst.msk [vmem:[#allocation5] sm:$0xff] %vm137_vm3, %v523_v15  ;;  %286 = vrot.lane.b32.xlu1 %v523_v15, %s580_s9  ;;  %486 = vmatmul.msk.f32.vlgmr.msra.gmra.mxu0 %vm44_vm0, %v523_v15 }
 0x4ea   :  { %v422_v16 = vpop.f32.mrf.mxu3 }
 0x4eb   :  { %v423_v17 = vadd.f32 %v877_v62, %v422_v16 }
 0x4ed   :  { %438 = vst [vmem:[#allocation3 + $0x20] sm:$0xff] %v423_v17  ;;  %v287_v18 = vpop.permute.xlu1 %286 }
 0x4ee   :  { %289 = vst.msk [vmem:[#allocation2 + $0x28] sm:$0xff] %vm137_vm3, %v287_v18 }
 0x4f2   :  { %v419_v19 = vpop.f32.mrf.mxu2 }
 0x4f3   :  { %v420_v20 = vadd.f32 %v877_v62, %v419_v19 }
 0x4f5   :  { %437 = vst [vmem:[#allocation3 + $0x18] sm:$0xff] %v420_v20  ;;  %v358_v21 = vld [vmem:[#allocation2 + $0x28] sm:$0xff] }
 0x4f6   :  { %493 = vmatmul.msk.f32.gmra.mxu3 %vm137_vm3, %v358_v21 }
 0x4f8   :  { %v309_v22 = vpop.f32.mrf.mxu0 }
 0x4f9   :  { %v310_v23 = vadd.f32 %v804_v13, %v309_v22 }
 0x4fb   :  { %524 = vtanh.f32 %v310_v23 }
 0x501   :  { %v525_v24 = vpop.eup %524 }
 0x502   :  { %319 = vrot.lane.b32.xlu2 %v525_v24, %s580_s9  ;;  %487 = vmatmul.msk.f32.vlgmr.msra.gmra.mxu1 %vm44_vm0, %v525_v24 }
 0x50a   :  { %314 = vrot.lane.b32.xlu2 %v525_v24, %s581_s0 }
 0x55c   :  { %v320_v25 = vpop.permute.xlu2 %319 }
 0x55d   :  { %322 = vst.msk [vmem:[#allocation2 + $0x30] sm:$0xff] %vm137_vm3, %v320_v25 }
 0x564   :  { %v315_v26 = vpop.permute.xlu2 %314  ;;  %v359_v27 = vld [vmem:[#allocation2 + $0x30] sm:$0xff] }
 0x565   :  { %318 = vst.msk [vmem:[#allocation5 + $0x8] sm:$0xff] %vm137_vm3, %v315_v26  ;;  %494 = vmatmul.msk.f32.gmra.mxu3 %vm137_vm3, %v359_v27 }
 0x579   :  { %v425_v28 = vpop.f32.mrf.mxu3 }
 0x57a   :  { %v426_v29 = vadd.f32 %v877_v62, %v425_v28 }
 0x57c   :  { %439 = vst [vmem:[#allocation3 + $0x28] sm:$0xff] %v426_v29 }
 0x57f   :  { %v342_v30 = vpop.f32.mrf.mxu1 }
 0x580   :  { %v343_v31 = vadd.f32 %v804_v13, %v342_v30 }
 0x582   :  { %526 = vtanh.f32 %v343_v31 }
 0x588   :  { %v527_v32 = vpop.eup %526 }
 0x589   :  { %347 = vrot.lane.b32.xlu1 %v527_v32, %s580_s9  ;;  %s585_s9 = smov [#allocation3]  }
 0x58a   :  { %s446_s10 = sshll.u32 %s585_s9, 4  ;;  %s447_s10 = int_to_ptr.vmem [resolvable:$true] %s446_s10 }
 0x5e8   :  { %v428_v33 = vpop.f32.mrf.mxu3 }
 0x5e9   :  { %v429_v34 = vadd.f32 %v877_v62, %v428_v33 }
 0x5eb   :  { %440 = vst [vmem:[#allocation3 + $0x30] sm:$0xff] %v429_v34 }
 0x5fb   :  { %v348_v35 = vpop.permute.xlu1 %347 }
 0x5fc   :  { %351 = vst.msk [vmem:[#allocation5 + $0x10] sm:$0xff] %vm137_vm3, %v348_v35 }
 0x5fd   :  { %352 = vst.msk [vmem:[#allocation2 + $0x38] sm:$0xff] %vm137_vm3, %v348_v35  ;;  %467 = dma.vmem_to_hbm [thread:$0]  %s460_s27, 384, %s462_s29, [#allocation6], %s583_s30, %s583_s30, %s584_s8  }
 0x604   :  { %v360_v36 = vld [vmem:[#allocation2 + $0x38] sm:$0xff] }
 0x605   :  { %495 = vmatmul.msk.f32.gmra.mxu3 %vm137_vm3, %v360_v36 }
 0x688   :  { %v431_v13 = vpop.f32.mrf.mxu3 }
 0x689   :  { %v432_v37 = vadd.f32 %v877_v62, %v431_v13 }
 0x68b   :  { %441 = vst [vmem:[#allocation3 + $0x38] sm:$0xff] %v432_v37 }
 0x68c   :  { %454 = dma.vmem_to_hbm [thread:$0]  %s447_s10, 1024, %s449_s13, [#allocation4], %s583_s30, %s583_s30, %s584_s8  }
 0x68d   :  { %576 = dma.done.wait [#allocation4], 1024  }
 0x68e   :  { %577 = vsyncadd [#allocation4], 4294966272 }
 0x68f   :  { %578 = dma.done.wait [#allocation6], 384  }
 0x690   :  { %579 = vsyncadd [#allocation6], 4294966912 }
 0x691   :  { %476 = vsyncpa [#allocation4], 1 }
 0x692   :  { %477 = vsyncpa [#allocation6], 1 }

</bundles_post_ra>
